<compile_context>
chip_gen: v6e
topology: v6e:2x2x1
jax: 0.10.0
libtpu: 0.0.40
codegen_flags: <defaults>
</compile_context>

<pallas_src>
import functools

import jax
import jax.numpy as jnp
from jax.experimental import pallas as pl
from jax.experimental.pallas import tpu as pltpu


def _cdiv(a, b):
    return (a + b - 1) // b


def _round_up(a, b):
    return _cdiv(a, b) * b


def _vmem_cap_bytes():
    """Generation-aware VMEM ceiling (~85% of physical)."""
    try:
        info = pltpu.get_tpu_info()
        cap = getattr(info, "vmem_capacity_bytes", None)
        if cap:
            return int(0.85 * int(cap))
    except Exception:
        pass
    return 54 << 20  # conservative fallback, safe for v7x's 64 MiB VMEM


def _rmsnorm_kernel(x_ref, w_ref, o_ref, *, eps, inv_hidden):
    # x_ref: (TM, Hp) tile; w_ref: (1, Hp) fp32 weight; o_ref: (TM, Hp).
    x = x_ref[...]
    x_f32 = x.astype(jnp.float32)
    # sum * (1/true_hidden) rather than mean(): padded lanes (if any) are
    # zero and must not contribute to the denominator.
    variance = jnp.sum(x_f32 * x_f32, axis=-1, keepdims=True) * inv_hidden
    inv = jax.lax.rsqrt(variance + eps)
    # Match torch: normalize in fp32, cast back to the input dtype, then
    # multiply by the fp32 weight (promotes to fp32), cast to output dtype.
    normed = (x_f32 * inv).astype(x.dtype)
    o_ref[...] = (w_ref[...] * normed.astype(jnp.float32)).astype(o_ref.dtype)


def _choose_tile_rows(rows, hidden_p, in_dtype, out_dtype,
                      vmem_budget_bytes=24 << 20,
                      max_block_rows=1024,
                      target_steps=8):
    """Row tile for a bandwidth-bound kernel.

    Upper bounds: ~24 MiB double-buffered working set and ~1024 rows (HBM
    roofline is flat past ~512-row tiles). Lower-side constraint: enough grid
    steps (>= target_steps when rows allow, tiles never below ~128 rows) so
    double-buffering overlaps DMA and both v7x TensorCores get iterations.
    """
    in_b = jnp.dtype(in_dtype).itemsize
    out_b = jnp.dtype(out_dtype).itemsize
    # Sublane packing: 8 rows for 32-bit, 16 for 16-bit, 32 for 8-bit inputs.
    packing = 8 * max(1, 4 // in_b)
    bytes_per_row = 2 * hidden_p * (in_b + out_b)  # double-buffered in + out
    tm = min(vmem_budget_bytes // max(1, bytes_per_row), max_block_rows)
    tm = max(packing, (tm // packing) * packing)
    rows_ceil = _round_up(rows, packing)
    tm = min(tm, rows_ceil)
    if rows_ceil > packing:
        tm_for_steps = _round_up(_cdiv(rows, target_steps), packing)
        tm = min(tm, max(tm_for_steps, min(128, rows_ceil)))
        tm = max(packing, (tm // packing) * packing)
    return tm


def _max_tm_for_vmem(hidden_p, in_b, out_b, vmem_cap, packing):
    """Largest row tile whose double-buffered working set fits the cap."""
    avail = vmem_cap - 2 * hidden_p * 4 - (2 << 20)  # weight bufs + headroom
    tm = max(packing, avail // max(1, 2 * hidden_p * (in_b + out_b)))
    return max(packing, (tm // packing) * packing)


def hnet_rmsnorm(x, weight, eps=1e-5, out_dtype=None, block_rows=None):
    """x: (..., hidden), weight: (hidden,). Returns same leading shape as x.

    out_dtype=None follows torch promotion (fp32 weight * input-dtype tensor
    -> fp32). Pass out_dtype=x.dtype to halve writeback for bf16 inputs
    (deviates from torch promotion; opt-in only).
    """
    orig_shape = x.shape
    hidden = orig_shape[-1]
    rows = 1
    for d in orig_shape[:-1]:
        rows *= d

    if out_dtype is None:
        out_dtype = jnp.promote_types(weight.dtype, x.dtype)

    x2 = x.reshape(rows, hidden)
    # Hoist the weight cast out of the kernel hot path.
    w2 = weight.reshape(1, hidden).astype(jnp.float32)

    # Lane-dense last dim: pad hidden to a multiple of 128 so stores are
    # unmasked vst. No-op when hidden is already 128-aligned.
    hidden_p = _round_up(hidden, 128)
    if hidden_p != hidden:
        x2 = jnp.pad(x2, ((0, 0), (0, hidden_p - hidden)))
        w2 = jnp.pad(w2, ((0, 0), (0, hidden_p - hidden)))

    in_b = jnp.dtype(x.dtype).itemsize
    out_b = jnp.dtype(out_dtype).itemsize
    packing = 8 * max(1, 4 // in_b)
    vmem_cap = _vmem_cap_bytes()

    if block_rows is None:
        tm = _choose_tile_rows(rows, hidden_p, x.dtype, out_dtype)
    else:
        # Round the user tile to sublane packing and clamp to the problem.
        tm = _round_up(max(1, min(block_rows, _round_up(rows, packing))),
                       packing)
    # Never exceed the per-generation VMEM budget (matters on v7x / big tm).
    tm = min(tm, _max_tm_for_vmem(hidden_p, in_b, out_b, vmem_cap, packing))

    # No row padding / output slicing: the grid uses cdiv and Mosaic masks
    # the partial boundary block. Safe only because RMSNorm is per-row; do
    # not add cross-row reductions without revisiting this.
    grid = _cdiv(rows, tm)

    # Double-buffered input + output tiles, plus the (double-buffered) weight.
    needed = 2 * tm * hidden_p * (in_b + out_b) + 2 * hidden_p * 4
    vmem_limit = min(int(1.5 * needed) + (1 << 20), vmem_cap)

    out = pl.pallas_call(
        functools.partial(_rmsnorm_kernel, eps=eps, inv_hidden=1.0 / hidden),
        out_shape=jax.ShapeDtypeStruct((rows, hidden_p), out_dtype),
        grid_spec=pltpu.PrefetchScalarGridSpec(
            num_scalar_prefetch=0,
            grid=(grid,),
            in_specs=[
                pl.BlockSpec((tm, hidden_p), lambda i: (i, 0)),
                # Constant index_map: weight tile is re-used every step.
                pl.BlockSpec((1, hidden_p), lambda i: (0, 0)),
            ],
            out_specs=pl.BlockSpec((tm, hidden_p), lambda i: (i, 0)),
        ),
        compiler_params=pltpu.CompilerParams(
            dimension_semantics=("parallel",),
            vmem_limit_bytes=vmem_limit,
        ),
    )(x2, w2)

    if hidden_p != hidden:
        out = out[:, :hidden]
    return out.reshape(orig_shape)


def _reference(x, weight, eps):
    x_f32 = x.astype(jnp.float32)
    var = jnp.mean(x_f32 * x_f32, axis=-1, keepdims=True)
    return weight * (x_f32 * jax.lax.rsqrt(var + eps)).astype(x.dtype)


if __name__ == "__main__":
    eps = 1e-5
    key = jax.random.PRNGKey(0)
    k1, k2, k3 = jax.random.split(key, 3)

    hidden = 128
    # nn.Parameter(torch.ones(hidden_size)) -> deterministic ones init.
    weight = jnp.ones((hidden,), dtype=jnp.float32)

    # Case 1: fp32 input, 128-aligned hidden.
    x = jax.random.normal(k1, (2, 8, hidden), dtype=jnp.float32)
    y = jax.block_until_ready(hnet_rmsnorm(x, weight, eps=eps))
    ref = _reference(x, weight, eps)
    assert y.shape == ref.shape and y.dtype == ref.dtype
    assert jnp.allclose(y, ref, atol=1e-5, rtol=1e-5)

    # Case 2: bf16 input with a row count that does NOT divide the tile
    # (exercises the masked boundary block + torch fp32-promotion output).
    xb = jax.random.normal(k2, (3, 5, hidden), dtype=jnp.bfloat16)
    yb = jax.block_until_ready(hnet_rmsnorm(xb, weight, eps=eps))
    refb = _reference(xb, weight, eps)
    assert yb.shape == refb.shape and yb.dtype == refb.dtype
    assert jnp.allclose(yb, refb, atol=1e-5, rtol=1e-5)

    # Case 3: hidden not a multiple of 128 (exercises lane padding and the
    # sum/true-hidden variance path).
    hidden3 = 96
    w3 = jnp.ones((hidden3,), dtype=jnp.float32)
    xc = jax.random.normal(k3, (2, 7, hidden3), dtype=jnp.float32)
    yc = jax.block_until_ready(hnet_rmsnorm(xc, w3, eps=eps))
    refc = _reference(xc, w3, eps)
    assert yc.shape == refc.shape and yc.dtype == refc.dtype
    assert jnp.allclose(yc, refc, atol=1e-5, rtol=1e-5)

    print("KERNEL_OK")
</pallas_src>

<mosaic_0001>
module attributes {stable_mosaic.version = 11 : i64} {
  func.func @_rmsnorm_kernel(%arg0: i32, %arg1: memref<16x128xf32, #tpu.memory_space<vmem>>, %arg2: memref<1x128xf32, #tpu.memory_space<vmem>>, %arg3: memref<16x128xf32, #tpu.memory_space<vmem>>) attributes {dimension_semantics = [#tpu.dimension_semantics<parallel>], iteration_bounds = array<i64: 1>, scalar_prefetch = 0 : i64, scratch_operands = 0 : i64, tpu.core_type = #tpu.core_type<tc>, window_params = [{transform_indices = @transform_0, window_bounds = array<i64: 16, 128>}, {pipeline_mode = #tpu.pipeline_mode<synchronous>, transform_indices = @transform_1, window_bounds = array<i64: 1, 128>}, {transform_indices = @transform_2, window_bounds = array<i64: 16, 128>}]} {
    %c0 = arith.constant 0 : index
    %c0_0 = arith.constant 0 : index
    %0 = vector.load %arg1[%c0, %c0_0] : memref<16x128xf32, #tpu.memory_space<vmem>>, vector<16x128xf32>
    %1 = arith.mulf %0, %0 : vector<16x128xf32>
    %cst = arith.constant dense<0.000000e+00> : vector<16xf32>
    %2 = vector.multi_reduction <add>, %1, %cst [1] : vector<16x128xf32> to vector<16xf32>
    %3 = vector.shape_cast %2 : vector<16xf32> to vector<16x1xf32>
    %cst_1 = arith.constant 7.812500e-03 : f32
    %4 = vector.broadcast %cst_1 : f32 to vector<16x1xf32>
    %5 = arith.mulf %3, %4 : vector<16x1xf32>
    %cst_2 = arith.constant 9.99999974E-6 : f32
    %6 = vector.broadcast %cst_2 : f32 to vector<16x1xf32>
    %7 = arith.addf %5, %6 : vector<16x1xf32>
    %8 = math.rsqrt %7 : vector<16x1xf32>
    %9 = vector.broadcast %8 : vector<16x1xf32> to vector<16x128xf32>
    %10 = arith.mulf %0, %9 : vector<16x128xf32>
    %c0_3 = arith.constant 0 : index
    %c0_4 = arith.constant 0 : index
    %11 = vector.load %arg2[%c0_3, %c0_4] : memref<1x128xf32, #tpu.memory_space<vmem>>, vector<1x128xf32>
    %12 = vector.broadcast %11 : vector<1x128xf32> to vector<16x128xf32>
    %13 = arith.mulf %12, %10 : vector<16x128xf32>
    %c0_5 = arith.constant 0 : index
    %c0_6 = arith.constant 0 : index
    %14 = vector.load %arg3[%c0_5, %c0_6] : memref<16x128xf32, #tpu.memory_space<vmem>>, vector<16x128xf32>
    tpu.vector_store %arg3[%c0_5, %c0_6], %13 {strides = array<i32>} : memref<16x128xf32, #tpu.memory_space<vmem>>, vector<16x128xf32>,
    return
  }
  func.func @transform_0(%arg0: i32) -> (i32, i32) {
    %c0_i32 = arith.constant 0 : i32
    %c0_i32_0 = arith.constant 0 : i32
    return %arg0, %c0_i32 : i32, i32
  }
  func.func @transform_1(%arg0: i32) -> (i32, i32) {
    %c0_i32 = arith.constant 0 : i32
    %c0_i32_0 = arith.constant 0 : i32
    %c0_i32_1 = arith.constant 0 : i32
    return %c0_i32, %c0_i32_0 : i32, i32
  }
  func.func @transform_2(%arg0: i32) -> (i32, i32) {
    %c0_i32 = arith.constant 0 : i32
    %c0_i32_0 = arith.constant 0 : i32
    return %arg0, %c0_i32 : i32, i32
  }
}

</mosaic_0001>

<bundles_post_ra>
// kernel: tpu_custom_call.1
= control target key start
LH: loop header
LB: loop body
LE: loop exit
PB: predicated region body
PF: predicated region fallthrough
CT: control target
= control target key end

     0   :  { %7 = vsyncpa [#allocation3], 0  ;;  %s157_s0 = inlined_call_operand.hbm [shape: f32[16,128], index: 0, kind: input, shape index: {}]   ;;  %s158_s1 = inlined_call_operand.vmem [shape: f32[1,128], index: 1, kind: input, shape index: {}]   ;;  %s159_s2 = inlined_call_operand.hbm [shape: f32[16,128], index: 2, kind: output, shape index: {}]  }
   0x1   :  { %8 = vsyncpa [#allocation4], 0  ;;  %s123_s9 = smov [#allocation2]  }
   0x2   :  { %s14_s10 = sshll.u32 %s123_s9, 4  ;;  %s15_s10 = int_to_ptr.vmem [resolvable:$true] %s14_s10 }
   0x3   :  { %s87_s11 = scalar_lea.vmem %s15_s10, 256  ;;  %p92_p1 = scmp.lt.s32.totalorder %s15_s10, %s15_s10 }
   0x4   :  { %p88_p0 = scmp.ne.s32.totalorder %s15_s10, %s87_s11  ;;  %p93_p2 = scmp.lt.s32.totalorder %s87_s11, %s87_s11 }
   0x6   :  { %p94_p3 = por %p93_p2, %p92_p1 }
   0x8   :  { %p95_p4 = pnand %p94_p3, %p88_p0 }
   0xa   :  { %98 = shalt.err (!%p95_p4)
}
   0xb   :  { %s124_s12 = smov 128   ;;  %s125_s13 = smov 8  }
   0xc   :  { %20 = dma.hbm_to_vmem [thread:$0]  %s157_s0, 256, %s15_s10, [#allocation3], %s124_s12, %s124_s12, %s125_s13  }
   0xd   :  { %119 = dma.done.wait [#allocation3], 256  }
   0xe   :  { %120 = vsyncadd [#allocation3], 4294967040  ;;  %v26_v0 = vld [vmem:[#allocation2] sm:$0xff]  ;;  %v27_v1 = vld [vmem:[#allocation2 + $0x8] sm:$0xff]  ;;  %s126_s0 = smov [#allocation5]  }
   0xf   :  { %v28_v2 = vmul.f32 %v26_v0, %v26_v0  ;;  %v29_v3 = vmul.f32 %v27_v1, %v27_v1  ;;  %v70_v11 = vld [vmem:[%s158_s1] ss:$0 sm:$0xff]  ;;  %s58_s18 = sshll.u32 %s126_s0, 4  ;;  %s59_s18 = int_to_ptr.vmem [resolvable:$true] %s58_s18 }
  0x10   :  { %s99_s19 = scalar_lea.vmem %s59_s18, 256  ;;  %p104_p6 = scmp.lt.s32.totalorder %s59_s18, %s59_s18 }
  0x11   :  { %30 = vadd.xlane.f32.xlu0 %v28_v2  ;;  %p100_p5 = scmp.ne.s32.totalorder %s59_s18, %s99_s19  ;;  %p105_p7 = scmp.lt.s32.totalorder %s99_s19, %s99_s19 }
  0x13   :  { %p106_p8 = por %p105_p7, %p104_p6 }
  0x15   :  { %32 = vadd.xlane.f32.xlu0 %v29_v3  ;;  %p107_p9 = pnand %p106_p8, %p100_p5 }
  0x9a   :  { %v31_v4 = vpop.xlane.xlu0 %30 }
  0x9b   :  { %v34_v5 = vmul.f32 0.0078125, %v31_v4 }
  0x9d   :  { %v36_v6 = vadd.f32 1e-05, %v34_v5 }
  0x9e   :  { %v33_v7 = vpop.xlane.xlu0 %32 }
  0x9f   :  { %75 = vrsqrt.f32 %v36_v6  ;;  %v35_v8 = vmul.f32 0.0078125, %v33_v7 }
  0xa1   :  { %v37_v9 = vadd.f32 1e-05, %v35_v8 }
  0xa3   :  { %77 = vrsqrt.f32 %v37_v9 }
  0xac   :  { %v76_v10 = vpop.eup %75 }
  0xad   :  { %v40_v12 = vmul.f32 %v76_v10, %v26_v0 }
  0xaf   :  { %v49_v13 = vmul.f32 %v70_v11, %v40_v12 }
  0xb0   :  { %v78_v14 = vpop.eup %77 }
  0xb1   :  { %v41_v15 = vmul.f32 %v78_v14, %v27_v1  ;;  %51 = vst [vmem:[#allocation5] sm:$0xff] %v49_v13 }
  0xb3   :  { %v50_v16 = vmul.f32 %v70_v11, %v41_v15 }
  0xb5   :  { %52 = vst [vmem:[#allocation5 + $0x8] sm:$0xff] %v50_v16 }
  0xb6   :  { %110 = shalt.err (!%p107_p9)
}
  0xb7   :  { %64 = dma.vmem_to_hbm [thread:$0]  %s59_s18, 256, %s159_s2, [#allocation4], %s124_s12, %s124_s12, %s125_s13  }
  0xb8   :  { %121 = dma.done.wait [#allocation4], 256  }
  0xb9   :  { %122 = vsyncadd [#allocation4], 4294967040 }
  0xba   :  { %68 = vsyncpa [#allocation3], 1 }
  0xbb   :  { %69 = vsyncpa [#allocation4], 1 }

</bundles_post_ra>
